<compile_context>
chip_gen: v7x
topology: tpu7x:2x2x1
jax: 0.10.0
libtpu: 0.0.40
codegen_flags: <defaults>
</compile_context>

<pallas_src>
import functools
import math

import jax
import jax.numpy as jnp
import numpy as np
from jax import lax
from jax.experimental import pallas as pl
from jax.experimental.pallas import tpu as pltpu


def _round_up(a, b):
    return (a + b - 1) // b * b


def _seg_reduce(v, n_groups, group_d, fn):
    """Per-group reduction along lanes; groups are contiguous `group_d`-wide lane
    segments. Returns a list of (rows, 1) arrays (one per group)."""
    return [
        fn(v[:, g * group_d:(g + 1) * group_d], axis=-1, keepdims=True)
        for g in range(n_groups)
    ]


def _seg_expand(parts, group_d):
    """Broadcast each (rows, 1) per-group value back over its group's lanes and
    re-assemble the dense (rows, n_groups*group_d) slab."""
    rows = parts[0].shape[0]
    tiles = [jnp.broadcast_to(p, (rows, group_d)) for p in parts]
    return tiles[0] if len(tiles) == 1 else jnp.concatenate(tiles, axis=-1)


def _gumbel_softmax_kernel(seed_ref, x_ref, o_ref, *, tau, hard, n_groups, group_d):
    tm, kd = x_ref.shape  # kd == n_groups * group_d

    # ---- stateless counter-based PRNG (pure jnp integer ops; Mosaic + interpret OK).
    # Key = global flat element index of the ORIGINAL (N, D) tensor (the fold is a
    # contiguous reshape, so row*kd + col is exactly that index) mixed with the seed.
    seed = seed_ref[0].astype(jnp.uint32)
    row0 = (pl.program_id(0) * tm).astype(jnp.uint32)
    row = lax.broadcasted_iota(jnp.int32, (tm, kd), 0).astype(jnp.uint32) + row0
    col = lax.broadcasted_iota(jnp.int32, (tm, kd), 1).astype(jnp.uint32)
    h = row * jnp.uint32(kd) + col

    # murmur3-style finalizer with the seed injected twice (avoids the trivial
    # "seed s, element e" == "seed s+1, element e-1" collisions).
    h = h * jnp.uint32(0x9E3779B9) + seed
    h = (h ^ (h >> jnp.uint32(16))) * jnp.uint32(0x85EBCA6B)
    h = h + seed
    h = (h ^ (h >> jnp.uint32(13))) * jnp.uint32(0xC2B2AE35)
    h = h ^ (h >> jnp.uint32(16))

    # Uniform in [0, 1) via the mantissa-bitcast trick (no int->float convert, no mul).
    fbits = (h >> jnp.uint32(9)) | jnp.uint32(0x3F800000)
    u = lax.bitcast_convert_type(fbits, jnp.float32) - jnp.float32(1.0)

    tiny = jnp.float32(1e-20)
    g = -jnp.log(-jnp.log(u + tiny) + tiny)  # Gumbel(0, 1) noise

    # Scaled noisy logits (dense over all 128 lanes).
    y = (x_ref[...].astype(jnp.float32) + g) * jnp.float32(1.0 / tau)

    if hard:
        # Eval path: one-hot at the per-group argmax of y (softmax is monotone, so the
        # argmax is identical) with first-index tie-break — no exp / sum / divide.
        mb = _seg_expand(_seg_reduce(y, n_groups, group_d, jnp.max), group_d)
        lane1 = lax.broadcasted_iota(jnp.int32, (tm, group_d), 1)
        lane_in_group = (
            lane1 if n_groups == 1 else jnp.concatenate([lane1] * n_groups, axis=-1)
        )
        cand = jnp.where(y == mb, lane_in_group, jnp.int32(group_d))
        first = _seg_expand(_seg_reduce(cand, n_groups, group_d, jnp.min), group_d)
        out = jnp.where(lane_in_group == first, jnp.float32(1.0), jnp.float32(0.0))
    else:
        # Training path: numerically-stable per-group softmax.
        mb = _seg_expand(_seg_reduce(y, n_groups, group_d, jnp.max), group_d)
        e = jnp.exp(y - mb)
        s_parts = _seg_reduce(e, n_groups, group_d, jnp.sum)
        inv_parts = [jnp.float32(1.0) / p for p in s_parts]  # tiny (tm, 1) divides
        out = e * _seg_expand(inv_parts, group_d)

    o_ref[...] = out.astype(o_ref.dtype)


def gumbel_softmax_bit_relaxation(x, seed, *, temperature=2.0, training=True,
                                  block_rows=None,
                                  vmem_budget_bytes=16 * 1024 * 1024):
    """Pallas forward of GumbelSoftmaxBitRelaxation.

    x           : array of any rank; softmax over the last axis.
    seed        : python int / int32 scalar used to key the in-kernel PRNG.
    temperature : tau.
    training    : module.training flag -> hard = not training.
    Note: the noise depends only on (seed, element index), not on the tiling.
    """
    orig_shape = x.shape
    d = int(orig_shape[-1])
    n = int(np.prod(orig_shape[:-1])) if len(orig_shape) > 1 else 1

    # Lane folding: pack k = 128/d softmax groups per kernel row (free, contiguous
    # reshape) so every load/store uses all 128 lanes instead of masked partial stores.
    if d < 128 and 128 % d == 0:
        k = math.gcd(128 // d, n)
    else:
        k = 1
    n2 = n // k
    kd = k * d

    x2 = x.reshape(n2, kd)

    # VMEM-aware row tile: ~16 bytes/elem for double-buffered in+out (f32) plus ~32
    # bytes/elem of f32 temporaries. Capped at 1024 rows -> a few MiB per step, which
    # fits comfortably on v5e/v6e (128 MiB VMEM) and v7x (64 MiB, 32 MiB scoped).
    if block_rows is None:
        per_row_bytes = kd * 48
        tm = vmem_budget_bytes // max(per_row_bytes, 1)
        tm = max(8, min(1024, (tm // 8) * 8))
    else:
        tm = int(block_rows)
    tm = min(tm, _round_up(n2, 8))

    # cdiv-style grid: pad the row remainder with zeros (padded rows are computed but
    # sliced off afterwards; they never contaminate real rows).
    n2p = _round_up(n2, tm)
    if n2p != n2:
        x2 = jnp.pad(x2, ((0, n2p - n2), (0, 0)))
    grid = (n2p // tm,)

    kernel = functools.partial(
        _gumbel_softmax_kernel,
        tau=float(temperature),
        hard=not training,
        n_groups=k,
        group_d=d,
    )
    seed_arr = jnp.asarray([seed], dtype=jnp.int32)

    out = pl.pallas_call(
        kernel,
        out_shape=jax.ShapeDtypeStruct((n2p, kd), x.dtype),
        grid_spec=pltpu.PrefetchScalarGridSpec(
            num_scalar_prefetch=1,
            grid=grid,
            in_specs=[pl.BlockSpec((tm, kd), lambda i, seed_ref: (i, 0))],
            out_specs=pl.BlockSpec((tm, kd), lambda i, seed_ref: (i, 0)),
        ),
        compiler_params=pltpu.CompilerParams(
            # Iterations are independent (stateless PRNG) -> let v7x's 2 TCs split it.
            dimension_semantics=("parallel",),
            vmem_limit_bytes=32 * 1024 * 1024,
        ),
    )(seed_arr, x2)

    if n2p != n2:
        out = out[:n2]
    return out.reshape(orig_shape)


if __name__ == "__main__":
    key = jax.random.PRNGKey(0)
    # Small NCHW-style logits tensor; softmax/gumbel over the last axis.
    x = jax.random.normal(key, (2, 4, 16, 16), dtype=jnp.float32)

    # training=True  -> hard=False (soft relaxed bits), matches module default.
    y_soft = gumbel_softmax_bit_relaxation(x, seed=0, temperature=2.0, training=True)
    y_soft = jax.block_until_ready(y_soft)

    # eval mode -> hard=True (one-hot forward value).
    y_hard = gumbel_softmax_bit_relaxation(x, seed=0, temperature=2.0, training=False)
    y_hard = jax.block_until_ready(y_hard)

    # Light sanity checks of the forward semantics.
    assert y_soft.shape == x.shape and y_hard.shape == x.shape
    row_sums = jnp.sum(y_soft, axis=-1)
    assert bool(jnp.all(jnp.abs(row_sums - 1.0) < 1e-4))
    hard_sums = jnp.sum(y_hard, axis=-1)
    assert bool(jnp.all(hard_sums == 1.0))
    assert bool(jnp.all((y_hard == 0.0) | (y_hard == 1.0)))

    print("KERNEL_OK")
</pallas_src>

<mosaic_0001>
module attributes {stable_mosaic.version = 11 : i64} {
  func.func @_gumbel_softmax_kernel(%arg0: i32, %arg1: memref<1xi32, #tpu.memory_space<smem>>, %arg2: memref<16x128xf32, #tpu.memory_space<vmem>>, %arg3: memref<16x128xf32, #tpu.memory_space<vmem>>) attributes {dimension_semantics = [#tpu.dimension_semantics<parallel>], iteration_bounds = array<i64: 1>, scalar_prefetch = 1 : i64, scratch_operands = 0 : i64, tpu.core_type = #tpu.core_type<tc>, window_params = [{transform_indices = @transform_0, window_bounds = array<i64: 16, 128>}, {transform_indices = @transform_1, window_bounds = array<i64: 16, 128>}]} {
    %c0 = arith.constant 0 : index
    %0 = memref.load %arg1[%c0] : memref<1xi32, #tpu.memory_space<smem>>
    %c16_i32 = arith.constant 16 : i32
    %1 = arith.muli %arg0, %c16_i32 : i32
    %2 = tpu.iota {dimensions = array<i32: 0>} : vector<16x128xi32>
    %3 = vector.broadcast %1 : i32 to vector<16x128xi32>
    %4 = arith.addi %2, %3 : vector<16x128xi32>
    %5 = tpu.iota {dimensions = array<i32: 1>} : vector<16x128xi32>
    %c128_i32 = arith.constant 128 : i32
    %6 = vector.broadcast %c128_i32 : i32 to vector<16x128xi32>
    %7 = arith.muli %4, %6 : vector<16x128xi32>
    %8 = arith.addi %7, %5 : vector<16x128xi32>
    %c-1640531527_i32 = arith.constant -1640531527 : i32
    %9 = vector.broadcast %c-1640531527_i32 : i32 to vector<16x128xi32>
    %10 = arith.muli %8, %9 : vector<16x128xi32>
    %11 = vector.broadcast %0 : i32 to vector<16x128xi32>
    %12 = arith.addi %10, %11 : vector<16x128xi32>
    %c16_i32_0 = arith.constant 16 : i32
    %13 = vector.broadcast %c16_i32_0 : i32 to vector<16x128xi32>
    %14 = arith.shrui %12, %13 : vector<16x128xi32>
    %15 = arith.xori %12, %14 : vector<16x128xi32>
    %c-2048144789_i32 = arith.constant -2048144789 : i32
    %16 = vector.broadcast %c-2048144789_i32 : i32 to vector<16x128xi32>
    %17 = arith.muli %15, %16 : vector<16x128xi32>
    %18 = vector.broadcast %0 : i32 to vector<16x128xi32>
    %19 = arith.addi %17, %18 : vector<16x128xi32>
    %c13_i32 = arith.constant 13 : i32
    %20 = vector.broadcast %c13_i32 : i32 to vector<16x128xi32>
    %21 = arith.shrui %19, %20 : vector<16x128xi32>
    %22 = arith.xori %19, %21 : vector<16x128xi32>
    %c-1028477387_i32 = arith.constant -1028477387 : i32
    %23 = vector.broadcast %c-1028477387_i32 : i32 to vector<16x128xi32>
    %24 = arith.muli %22, %23 : vector<16x128xi32>
    %c16_i32_1 = arith.constant 16 : i32
    %25 = vector.broadcast %c16_i32_1 : i32 to vector<16x128xi32>
    %26 = arith.shrui %24, %25 : vector<16x128xi32>
    %27 = arith.xori %24, %26 : vector<16x128xi32>
    %c9_i32 = arith.constant 9 : i32
    %28 = vector.broadcast %c9_i32 : i32 to vector<16x128xi32>
    %29 = arith.shrui %27, %28 : vector<16x128xi32>
    %c1065353216_i32 = arith.constant 1065353216 : i32
    %30 = vector.broadcast %c1065353216_i32 : i32 to vector<16x128xi32>
    %31 = arith.ori %29, %30 : vector<16x128xi32>
    %32 = tpu.bitcast %31 : vector<16x128xi32> -> vector<16x128xf32>
    %cst = arith.constant 1.000000e+00 : f32
    %33 = vector.broadcast %cst : f32 to vector<16x128xf32>
    %34 = arith.subf %32, %33 : vector<16x128xf32>
    %cst_2 = arith.constant 9.99999968E-21 : f32
    %35 = vector.broadcast %cst_2 : f32 to vector<16x128xf32>
    %36 = arith.addf %34, %35 : vector<16x128xf32>
    %37 = math.log %36 : vector<16x128xf32>
    %cst_3 = arith.constant 0.000000e+00 : f32
    %38 = vector.broadcast %cst_3 : f32 to vector<16x128xf32>
    %39 = arith.subf %38, %37 : vector<16x128xf32>
    %cst_4 = arith.constant 9.99999968E-21 : f32
    %40 = vector.broadcast %cst_4 : f32 to vector<16x128xf32>
    %41 = arith.addf %39, %40 : vector<16x128xf32>
    %42 = math.log %41 : vector<16x128xf32>
    %cst_5 = arith.constant 0.000000e+00 : f32
    %43 = vector.broadcast %cst_5 : f32 to vector<16x128xf32>
    %44 = arith.subf %43, %42 : vector<16x128xf32>
    %c0_6 = arith.constant 0 : index
    %c0_7 = arith.constant 0 : index
    %45 = vector.load %arg2[%c0_6, %c0_7] : memref<16x128xf32, #tpu.memory_space<vmem>>, vector<16x128xf32>
    %46 = arith.addf %45, %44 : vector<16x128xf32>
    %cst_8 = arith.constant 5.000000e-01 : f32
    %47 = vector.broadcast %cst_8 : f32 to vector<16x128xf32>
    %48 = arith.mulf %46, %47 : vector<16x128xf32>
    %49 = vector.extract_strided_slice %48 {offsets = [0, 0], sizes = [16, 16], strides = [1, 1]} : vector<16x128xf32> to vector<16x16xf32>
    %cst_9 = arith.constant dense<0xFF800000> : vector<16xf32>
    %50 = vector.multi_reduction <maximumf>, %49, %cst_9 [1] : vector<16x16xf32> to vector<16xf32>
    %51 = vector.shape_cast %50 : vector<16xf32> to vector<16x1xf32>
    %52 = vector.extract_strided_slice %48 {offsets = [0, 16], sizes = [16, 16], strides = [1, 1]} : vector<16x128xf32> to vector<16x16xf32>
    %cst_10 = arith.constant dense<0xFF800000> : vector<16xf32>
    %53 = vector.multi_reduction <maximumf>, %52, %cst_10 [1] : vector<16x16xf32> to vector<16xf32>
    %54 = vector.shape_cast %53 : vector<16xf32> to vector<16x1xf32>
    %55 = vector.extract_strided_slice %48 {offsets = [0, 32], sizes = [16, 16], strides = [1, 1]} : vector<16x128xf32> to vector<16x16xf32>
    %cst_11 = arith.constant dense<0xFF800000> : vector<16xf32>
    %56 = vector.multi_reduction <maximumf>, %55, %cst_11 [1] : vector<16x16xf32> to vector<16xf32>
    %57 = vector.shape_cast %56 : vector<16xf32> to vector<16x1xf32>
    %58 = vector.extract_strided_slice %48 {offsets = [0, 48], sizes = [16, 16], strides = [1, 1]} : vector<16x128xf32> to vector<16x16xf32>
    %cst_12 = arith.constant dense<0xFF800000> : vector<16xf32>
    %59 = vector.multi_reduction <maximumf>, %58, %cst_12 [1] : vector<16x16xf32> to vector<16xf32>
    %60 = vector.shape_cast %59 : vector<16xf32> to vector<16x1xf32>
    %61 = vector.extract_strided_slice %48 {offsets = [0, 64], sizes = [16, 16], strides = [1, 1]} : vector<16x128xf32> to vector<16x16xf32>
    %cst_13 = arith.constant dense<0xFF800000> : vector<16xf32>
    %62 = vector.multi_reduction <maximumf>, %61, %cst_13 [1] : vector<16x16xf32> to vector<16xf32>
    %63 = vector.shape_cast %62 : vector<16xf32> to vector<16x1xf32>
    %64 = vector.extract_strided_slice %48 {offsets = [0, 80], sizes = [16, 16], strides = [1, 1]} : vector<16x128xf32> to vector<16x16xf32>
    %cst_14 = arith.constant dense<0xFF800000> : vector<16xf32>
    %65 = vector.multi_reduction <maximumf>, %64, %cst_14 [1] : vector<16x16xf32> to vector<16xf32>
    %66 = vector.shape_cast %65 : vector<16xf32> to vector<16x1xf32>
    %67 = vector.extract_strided_slice %48 {offsets = [0, 96], sizes = [16, 16], strides = [1, 1]} : vector<16x128xf32> to vector<16x16xf32>
    %cst_15 = arith.constant dense<0xFF800000> : vector<16xf32>
    %68 = vector.multi_reduction <maximumf>, %67, %cst_15 [1] : vector<16x16xf32> to vector<16xf32>
    %69 = vector.shape_cast %68 : vector<16xf32> to vector<16x1xf32>
    %70 = vector.extract_strided_slice %48 {offsets = [0, 112], sizes = [16, 16], strides = [1, 1]} : vector<16x128xf32> to vector<16x16xf32>
    %cst_16 = arith.constant dense<0xFF800000> : vector<16xf32>
    %71 = vector.multi_reduction <maximumf>, %70, %cst_16 [1] : vector<16x16xf32> to vector<16xf32>
    %72 = vector.shape_cast %71 : vector<16xf32> to vector<16x1xf32>
    %73 = vector.shape_cast %51 : vector<16x1xf32> to vector<16x1xf32>
    %74 = vector.broadcast %73 : vector<16x1xf32> to vector<16x16xf32>
    %75 = vector.shape_cast %54 : vector<16x1xf32> to vector<16x1xf32>
    %76 = vector.broadcast %75 : vector<16x1xf32> to vector<16x16xf32>
    %77 = vector.shape_cast %57 : vector<16x1xf32> to vector<16x1xf32>
    %78 = vector.broadcast %77 : vector<16x1xf32> to vector<16x16xf32>
    %79 = vector.shape_cast %60 : vector<16x1xf32> to vector<16x1xf32>
    %80 = vector.broadcast %79 : vector<16x1xf32> to vector<16x16xf32>
    %81 = vector.shape_cast %63 : vector<16x1xf32> to vector<16x1xf32>
    %82 = vector.broadcast %81 : vector<16x1xf32> to vector<16x16xf32>
    %83 = vector.shape_cast %66 : vector<16x1xf32> to vector<16x1xf32>
    %84 = vector.broadcast %83 : vector<16x1xf32> to vector<16x16xf32>
    %85 = vector.shape_cast %69 : vector<16x1xf32> to vector<16x1xf32>
    %86 = vector.broadcast %85 : vector<16x1xf32> to vector<16x16xf32>
    %87 = vector.shape_cast %72 : vector<16x1xf32> to vector<16x1xf32>
    %88 = vector.broadcast %87 : vector<16x1xf32> to vector<16x16xf32>
    %89 = tpu.concatenate %74, %76, %78, %80, %82, %84, %86, %88 in 1 : vector<16x16xf32>, vector<16x16xf32>, vector<16x16xf32>, vector<16x16xf32>, vector<16x16xf32>, vector<16x16xf32>, vector<16x16xf32>, vector<16x16xf32> -> vector<16x128xf32>
    %90 = arith.subf %48, %89 : vector<16x128xf32>
    %91 = math.exp %90 : vector<16x128xf32>
    %92 = vector.extract_strided_slice %91 {offsets = [0, 0], sizes = [16, 16], strides = [1, 1]} : vector<16x128xf32> to vector<16x16xf32>
    %cst_17 = arith.constant dense<0.000000e+00> : vector<16xf32>
    %93 = vector.multi_reduction <add>, %92, %cst_17 [1] : vector<16x16xf32> to vector<16xf32>
    %94 = vector.shape_cast %93 : vector<16xf32> to vector<16x1xf32>
    %95 = vector.extract_strided_slice %91 {offsets = [0, 16], sizes = [16, 16], strides = [1, 1]} : vector<16x128xf32> to vector<16x16xf32>
    %cst_18 = arith.constant dense<0.000000e+00> : vector<16xf32>
    %96 = vector.multi_reduction <add>, %95, %cst_18 [1] : vector<16x16xf32> to vector<16xf32>
    %97 = vector.shape_cast %96 : vector<16xf32> to vector<16x1xf32>
    %98 = vector.extract_strided_slice %91 {offsets = [0, 32], sizes = [16, 16], strides = [1, 1]} : vector<16x128xf32> to vector<16x16xf32>
    %cst_19 = arith.constant dense<0.000000e+00> : vector<16xf32>
    %99 = vector.multi_reduction <add>, %98, %cst_19 [1] : vector<16x16xf32> to vector<16xf32>
    %100 = vector.shape_cast %99 : vector<16xf32> to vector<16x1xf32>
    %101 = vector.extract_strided_slice %91 {offsets = [0, 48], sizes = [16, 16], strides = [1, 1]} : vector<16x128xf32> to vector<16x16xf32>
    %cst_20 = arith.constant dense<0.000000e+00> : vector<16xf32>
    %102 = vector.multi_reduction <add>, %101, %cst_20 [1] : vector<16x16xf32> to vector<16xf32>
    %103 = vector.shape_cast %102 : vector<16xf32> to vector<16x1xf32>
    %104 = vector.extract_strided_slice %91 {offsets = [0, 64], sizes = [16, 16], strides = [1, 1]} : vector<16x128xf32> to vector<16x16xf32>
    %cst_21 = arith.constant dense<0.000000e+00> : vector<16xf32>
    %105 = vector.multi_reduction <add>, %104, %cst_21 [1] : vector<16x16xf32> to vector<16xf32>
    %106 = vector.shape_cast %105 : vector<16xf32> to vector<16x1xf32>
    %107 = vector.extract_strided_slice %91 {offsets = [0, 80], sizes = [16, 16], strides = [1, 1]} : vector<16x128xf32> to vector<16x16xf32>
    %cst_22 = arith.constant dense<0.000000e+00> : vector<16xf32>
    %108 = vector.multi_reduction <add>, %107, %cst_22 [1] : vector<16x16xf32> to vector<16xf32>
    %109 = vector.shape_cast %108 : vector<16xf32> to vector<16x1xf32>
    %110 = vector.extract_strided_slice %91 {offsets = [0, 96], sizes = [16, 16], strides = [1, 1]} : vector<16x128xf32> to vector<16x16xf32>
    %cst_23 = arith.constant dense<0.000000e+00> : vector<16xf32>
    %111 = vector.multi_reduction <add>, %110, %cst_23 [1] : vector<16x16xf32> to vector<16xf32>
    %112 = vector.shape_cast %111 : vector<16xf32> to vector<16x1xf32>
    %113 = vector.extract_strided_slice %91 {offsets = [0, 112], sizes = [16, 16], strides = [1, 1]} : vector<16x128xf32> to vector<16x16xf32>
    %cst_24 = arith.constant dense<0.000000e+00> : vector<16xf32>
    %114 = vector.multi_reduction <add>, %113, %cst_24 [1] : vector<16x16xf32> to vector<16xf32>
    %115 = vector.shape_cast %114 : vector<16xf32> to vector<16x1xf32>
    %cst_25 = arith.constant 1.000000e+00 : f32
    %116 = vector.broadcast %cst_25 : f32 to vector<16x1xf32>
    %117 = arith.divf %116, %94 : vector<16x1xf32>
    %cst_26 = arith.constant 1.000000e+00 : f32
    %118 = vector.broadcast %cst_26 : f32 to vector<16x1xf32>
    %119 = arith.divf %118, %97 : vector<16x1xf32>
    %cst_27 = arith.constant 1.000000e+00 : f32
    %120 = vector.broadcast %cst_27 : f32 to vector<16x1xf32>
    %121 = arith.divf %120, %100 : vector<16x1xf32>
    %cst_28 = arith.constant 1.000000e+00 : f32
    %122 = vector.broadcast %cst_28 : f32 to vector<16x1xf32>
    %123 = arith.divf %122, %103 : vector<16x1xf32>
    %cst_29 = arith.constant 1.000000e+00 : f32
    %124 = vector.broadcast %cst_29 : f32 to vector<16x1xf32>
    %125 = arith.divf %124, %106 : vector<16x1xf32>
    %cst_30 = arith.constant 1.000000e+00 : f32
    %126 = vector.broadcast %cst_30 : f32 to vector<16x1xf32>
    %127 = arith.divf %126, %109 : vector<16x1xf32>
    %cst_31 = arith.constant 1.000000e+00 : f32
    %128 = vector.broadcast %cst_31 : f32 to vector<16x1xf32>
    %129 = arith.divf %128, %112 : vector<16x1xf32>
    %cst_32 = arith.constant 1.000000e+00 : f32
    %130 = vector.broadcast %cst_32 : f32 to vector<16x1xf32>
    %131 = arith.divf %130, %115 : vector<16x1xf32>
    %132 = vector.shape_cast %117 : vector<16x1xf32> to vector<16x1xf32>
    %133 = vector.broadcast %132 : vector<16x1xf32> to vector<16x16xf32>
    %134 = vector.shape_cast %119 : vector<16x1xf32> to vector<16x1xf32>
    %135 = vector.broadcast %134 : vector<16x1xf32> to vector<16x16xf32>
    %136 = vector.shape_cast %121 : vector<16x1xf32> to vector<16x1xf32>
    %137 = vector.broadcast %136 : vector<16x1xf32> to vector<16x16xf32>
    %138 = vector.shape_cast %123 : vector<16x1xf32> to vector<16x1xf32>
    %139 = vector.broadcast %138 : vector<16x1xf32> to vector<16x16xf32>
    %140 = vector.shape_cast %125 : vector<16x1xf32> to vector<16x1xf32>
    %141 = vector.broadcast %140 : vector<16x1xf32> to vector<16x16xf32>
    %142 = vector.shape_cast %127 : vector<16x1xf32> to vector<16x1xf32>
    %143 = vector.broadcast %142 : vector<16x1xf32> to vector<16x16xf32>
    %144 = vector.shape_cast %129 : vector<16x1xf32> to vector<16x1xf32>
    %145 = vector.broadcast %144 : vector<16x1xf32> to vector<16x16xf32>
    %146 = vector.shape_cast %131 : vector<16x1xf32> to vector<16x1xf32>
    %147 = vector.broadcast %146 : vector<16x1xf32> to vector<16x16xf32>
    %148 = tpu.concatenate %133, %135, %137, %139, %141, %143, %145, %147 in 1 : vector<16x16xf32>, vector<16x16xf32>, vector<16x16xf32>, vector<16x16xf32>, vector<16x16xf32>, vector<16x16xf32>, vector<16x16xf32>, vector<16x16xf32> -> vector<16x128xf32>
    %149 = arith.mulf %91, %148 : vector<16x128xf32>
    %c0_33 = arith.constant 0 : index
    %c0_34 = arith.constant 0 : index
    %150 = vector.load %arg3[%c0_33, %c0_34] : memref<16x128xf32, #tpu.memory_space<vmem>>, vector<16x128xf32>
    tpu.vector_store %arg3[%c0_33, %c0_34], %149 {strides = array<i32>} : memref<16x128xf32, #tpu.memory_space<vmem>>, vector<16x128xf32>,
    return
  }
  func.func @transform_0(%arg0: i32, %arg1: memref<1xi32, #tpu.memory_space<smem>>) -> (i32, i32) {
    %c0_i32 = arith.constant 0 : i32
    %c0_i32_0 = arith.constant 0 : i32
    return %arg0, %c0_i32 : i32, i32
  }
  func.func @transform_1(%arg0: i32, %arg1: memref<1xi32, #tpu.memory_space<smem>>) -> (i32, i32) {
    %c0_i32 = arith.constant 0 : i32
    %c0_i32_0 = arith.constant 0 : i32
    return %arg0, %c0_i32 : i32, i32
  }
}

</mosaic_0001>

<bundles_post_ra>
// kernel: tpu_custom_call.1
= control target key start
LH: loop header
LB: loop body
LE: loop exit
PB: predicated region body
PF: predicated region fallthrough
CT: control target
= control target key end

     0   :  { %8 = vsyncpa [#allocation5], 0  ;;  %s587_s0 = inlined_call_operand.<no memory space> [shape: s32[1], index: 0, kind: input, shape index: {}]   ;;  %s588_s1 = inlined_call_operand.hbm [shape: f32[16,128], index: 1, kind: input, shape index: {}]   ;;  %s589_s2 = inlined_call_operand.hbm [shape: f32[16,128], index: 2, kind: output, shape index: {}]  }
   0x1   :  { %9 = vsyncpa [#allocation6], 0  ;;  %s438_s9 = smov [#allocation4]   ;;  %s390_s13 = scalar_lea.hbm %s588_s1, 256 }
   0x2   :  { %s15_s10 = sshll.u32 %s438_s9, 4  ;;  %p391_p0 = scmp.ne.s32.totalorder %s588_s1, %s390_s13  ;;  %s16_s10 = int_to_ptr.vmem [resolvable:$true] %s15_s10 }
   0x3   :  { %p394_p1 = scmp.lt.u32.totalorder %s390_s13, %s588_s1 }
   0x5   :  { %p396_p2 = pnand %p394_p1, %p391_p0 }
   0x7   :  { %399 = shalt.err (!%p396_p2)
}
   0x8   :  { %s400_s18 = scalar_lea.vmem %s16_s10, 256  ;;  %p405_p4 = scmp.lt.s32.totalorder %s16_s10, %s16_s10 }
   0x9   :  { %p401_p3 = scmp.ne.s32.totalorder %s16_s10, %s400_s18  ;;  %p406_p5 = scmp.lt.s32.totalorder %s400_s18, %s400_s18 }
   0xb   :  { %p407_p6 = por %p406_p5, %p405_p4 }
   0xd   :  { %p408_p7 = pnand %p407_p6, %p401_p3 }
   0xf   :  { %411 = shalt.err (!%p408_p7)
}
  0x10   :  { %s439_s19 = smov 128   ;;  %s440_s20 = smov 8  }
  0x11   :  { %21 = dma.hbm_to_vmem [thread:$0]  %s588_s1, 256, %s16_s10, [#allocation5], %s439_s19, %s439_s19, %s440_s20  }
  0x12   :  { %434 = dma.done.wait [#allocation5], 256  }
  0x13   :  { %435 = vsyncadd [#allocation5], 4294967040  ;;  %v27_v0 = vlaneseq  ;;  %v41_v7 = vstv %s587_s0  ;;  %v86_v50 = vld [vmem:[#allocation4] sm:$0xff]  ;;  %v87_v53 = vld [vmem:[#allocation4 + $0x8] sm:$0xff]  ;;  %vm99_vm0 = vcmask 261248   ;;  %vm92_vm1 = vcmask 130048  }
  0x14   :  { %vm106_vm2 = vcmask 392448   ;;  %vm113_vm3 = vcmask 523648   ;;  %vm120_vm4 = vcmask 654848   ;;  %vm127_vm5 = vcmask 786048   ;;  %s441_s0 = smov 64   ;;  %s442_s1 = smov 112  }
  0x15   :  { %v28_v1 = vshrl.u32 %v27_v0, 7  ;;  %v34_v2 = vand.u32 127, %v27_v0  ;;  %vm134_vm6 = vcmask 917248   ;;  %vm141_vm7 = vcmask 1048448   ;;  %s443_s25 = smov 96   ;;  %s444_s26 = smov 80  }
  0x16   :  { %vm150_vm8 = vcmask 261120   ;;  %vm153_vm9 = vcmask 392192   ;;  %vm156_vm10 = vcmask 523264   ;;  %vm159_vm11 = vcmask 654336   ;;  %s445_s27 = smov 48   ;;  %s446_s28 = smov 32  }
  0x17   :  { %v35_v3 = vmul.u32 128, %v28_v1  ;;  %v29_v4 = vadd.s32 8, %v28_v1  ;;  %vm162_vm12 = vcmask 785408   ;;  %vm165_vm13 = vcmask 916480   ;;  %s447_s29 = smov 16   ;;  %s448_s30 = smov [#allocation7]  }
  0x18   :  { %s321_s3 = sshll.u32 %s448_s30, 4  ;;  %s322_s3 = int_to_ptr.vmem [resolvable:$true] %s321_s3 }
  0x19   :  { %v37_v5 = vadd.s32 %v35_v3, %v34_v2  ;;  %v36_v6 = vmul.u32 128, %v29_v4  ;;  %s412_s4 = scalar_lea.vmem %s322_s3, 256  ;;  %p417_p9 = scmp.lt.s32.totalorder %s322_s3, %s322_s3 }
  0x1a   :  { %p413_p8 = scmp.ne.s32.totalorder %s322_s3, %s412_s4  ;;  %p418_p10 = scmp.lt.s32.totalorder %s412_s4, %s412_s4 }
  0x1b   :  { %v39_v8 = vmul.u32 2654435769, %v37_v5  ;;  %v38_v9 = vadd.s32 %v36_v6, %v34_v2 }
  0x1c   :  { %p419_p11 = por %p418_p10, %p417_p9 }
  0x1d   :  { %v42_v10 = vadd.s32 %v41_v7, %v39_v8  ;;  %v40_v11 = vmul.u32 2654435769, %v38_v9 }
  0x1e   :  { %p420_p12 = pnand %p419_p11, %p413_p8 }
  0x1f   :  { %v44_v12 = vshrl.u32 %v42_v10, 16  ;;  %v43_v13 = vadd.s32 %v41_v7, %v40_v11 }
  0x21   :  { %v46_v14 = vxor.u32 %v44_v12, %v42_v10  ;;  %v45_v15 = vshrl.u32 %v43_v13, 16 }
  0x23   :  { %v48_v16 = vmul.u32 2246822507, %v46_v14  ;;  %v47_v17 = vxor.u32 %v45_v15, %v43_v13 }
  0x25   :  { %v50_v18 = vadd.s32 %v48_v16, %v41_v7  ;;  %v49_v19 = vmul.u32 2246822507, %v47_v17 }
  0x27   :  { %v52_v20 = vshrl.u32 %v50_v18, 13  ;;  %v51_v21 = vadd.s32 %v49_v19, %v41_v7 }
  0x29   :  { %v54_v22 = vxor.u32 %v52_v20, %v50_v18  ;;  %v53_v23 = vshrl.u32 %v51_v21, 13 }
  0x2b   :  { %v56_v24 = vmul.u32 3266489909, %v54_v22  ;;  %v55_v25 = vxor.u32 %v53_v23, %v51_v21 }
  0x2d   :  { %v58_v26 = vshrl.u32 %v56_v24, 16  ;;  %v57_v27 = vmul.u32 3266489909, %v55_v25 }
  0x2f   :  { %v60_v28 = vxor.u32 %v58_v26, %v56_v24  ;;  %v59_v29 = vshrl.u32 %v57_v27, 16 }
  0x31   :  { %v62_v30 = vshrl.u32 %v60_v28, 9  ;;  %v61_v31 = vxor.u32 %v59_v29, %v57_v27 }
  0x33   :  { %v64_v32 = vor.u32 1065353216, %v62_v30  ;;  %v63_v33 = vshrl.u32 %v61_v31, 9 }
  0x35   :  { %v333_v34 = vadd.f32 -1.0, %v64_v32  ;;  %v65_v35 = vor.u32 1065353216, %v63_v33 }
  0x37   :  { %v70_v36 = vadd.f32 1e-20, %v333_v34  ;;  %v334_v37 = vadd.f32 -1.0, %v65_v35 }
  0x39   :  { %346 = vlog2.f32 %v70_v36  ;;  %v71_v38 = vadd.f32 1e-20, %v334_v37 }
  0x3b   :  { %348 = vlog2.f32 %v71_v38 }
  0x43   :  { %v347_v39 = vpop.eup %346 }
  0x44   :  { %v73_v40 = vmul.f32 0.6931472, %v347_v39 }
  0x45   :  { %v349_v41 = vpop.eup %348 }
  0x46   :  { %v76_v42 = vsub.f32 0.0, %v73_v40  ;;  %v75_v43 = vmul.f32 0.6931472, %v349_v41 }
  0x48   :  { %v78_v44 = vadd.f32 1e-20, %v76_v42  ;;  %v77_v45 = vsub.f32 0.0, %v75_v43 }
  0x4a   :  { %350 = vlog2.f32 %v78_v44  ;;  %v79_v46 = vadd.f32 1e-20, %v77_v45 }
  0x4c   :  { %352 = vlog2.f32 %v79_v46 }
  0x54   :  { %v351_v47 = vpop.eup %350 }
  0x55   :  { %v81_v48 = vmul.f32 0.6931472, %v351_v47 }
  0x56   :  { %v353_v49 = vpop.eup %352 }
  0x57   :  { %v84_v51 = vsub.f32 0.0, %v81_v48  ;;  %v83_v52 = vmul.f32 0.6931472, %v353_v49 }
  0x59   :  { %v88_v54 = vadd.f32 %v86_v50, %v84_v51  ;;  %v85_v55 = vsub.f32 0.0, %v83_v52 }
  0x5b   :  { %v482_v56 = vmul.f32 0.5, %v88_v54  ;;  %v89_v57 = vadd.f32 %v87_v53, %v85_v55 }
  0x5d   :  { %v100_v58 = vsel %vm99_vm0, %v482_v56, -inf  ;;  %v93_v59 = vsel %vm92_vm1, %v482_v56, -inf  ;;  %v487_v60 = vmul.f32 0.5, %v89_v57  ;;  %v107_v62 = vsel %vm106_vm2, %v482_v56, -inf }
  0x5e   :  { %101 = vmax.xlane.f32.xlu1 %v100_v58  ;;  %94 = vmax.xlane.f32.xlu0 %v93_v59  ;;  %v114_v0 = vsel %vm113_vm3, %v482_v56, -inf  ;;  %v121_v2 = vsel %vm120_vm4, %v482_v56, -inf  ;;  %v128_v4 = vsel %vm127_vm5, %v482_v56, -inf  ;;  %v135_v8 = vsel %vm134_vm6, %v482_v56, -inf }
  0x5f   :  { %v103_v61 = vsel %vm99_vm0, %v487_v60, -inf  ;;  %v110_v63 = vsel %vm106_vm2, %v487_v60, -inf  ;;  %v117_v1 = vsel %vm113_vm3, %v487_v60, -inf  ;;  %v124_v3 = vsel %vm120_vm4, %v487_v60, -inf }
  0x60   :  { %v131_v5 = vsel %vm127_vm5, %v487_v60, -inf  ;;  %v96_v6 = vsel %vm92_vm1, %v487_v60, -inf  ;;  %v138_v7 = vsel %vm134_vm6, %v487_v60, -inf  ;;  %v145_v9 = vsel %vm141_vm7, %v487_v60, -inf }
  0x61   :  { %v142_v10 = vsel %vm141_vm7, %v482_v56, -inf }
  0x62   :  { %104 = vmax.xlane.f32.xlu1 %v103_v61  ;;  %108 = vmax.xlane.f32.xlu0 %v107_v62 }
  0x66   :  { %111 = vmax.xlane.f32.xlu1 %v110_v63  ;;  %115 = vmax.xlane.f32.xlu0 %v114_v0 }
  0x6a   :  { %118 = vmax.xlane.f32.xlu1 %v117_v1  ;;  %122 = vmax.xlane.f32.xlu0 %v121_v2 }
  0x6e   :  { %125 = vmax.xlane.f32.xlu1 %v124_v3  ;;  %129 = vmax.xlane.f32.xlu0 %v128_v4 }
  0x72   :  { %132 = vmax.xlane.f32.xlu1 %v131_v5  ;;  %97 = vmax.xlane.f32.xlu0 %v96_v6 }
  0x76   :  { %139 = vmax.xlane.f32.xlu1 %v138_v7  ;;  %136 = vmax.xlane.f32.xlu0 %v135_v8 }
  0x7a   :  { %146 = vmax.xlane.f32.xlu1 %v145_v9  ;;  %143 = vmax.xlane.f32.xlu0 %v142_v10 }
  0xeb   :  { %v102_v11 = vpop.xlane.xlu1 %101  ;;  %v95_v12 = vpop.xlane.xlu0 %94 }
  0xec   :  { %v148_v25 = vsel %vm92_vm1, %v95_v12, %v102_v11 }
  0xef   :  { %v105_v13 = vpop.xlane.xlu1 %104  ;;  %v109_v14 = vpop.xlane.xlu0 %108 }
  0xf0   :  { %v151_v27 = vsel %vm150_vm8, %v148_v25, %v109_v14 }
  0xf3   :  { %v112_v15 = vpop.xlane.xlu1 %111  ;;  %v116_v16 = vpop.xlane.xlu0 %115 }
  0xf4   :  { %v154_v31 = vsel %vm153_vm9, %v151_v27, %v116_v16 }
  0xf7   :  { %v119_v17 = vpop.xlane.xlu1 %118  ;;  %v123_v18 = vpop.xlane.xlu0 %122 }
  0xf8   :  { %v157_v33 = vsel %vm156_vm10, %v154_v31, %v123_v18 }
  0xfb   :  { %v126_v19 = vpop.xlane.xlu1 %125  ;;  %v130_v20 = vpop.xlane.xlu0 %129 }
  0xfc   :  { %v160_v34 = vsel %vm159_vm11, %v157_v33, %v130_v20 }
  0xff   :  { %v133_v21 = vpop.xlane.xlu1 %132  ;;  %v98_v22 = vpop.xlane.xlu0 %97 }
 0x100   :  { %v149_v23 = vsel %vm92_vm1, %v98_v22, %v105_v13 }
 0x101   :  { %v152_v24 = vsel %vm150_vm8, %v149_v23, %v112_v15 }
 0x102   :  { %v155_v26 = vsel %vm153_vm9, %v152_v24, %v119_v17 }
 0x103   :  { %v140_v28 = vpop.xlane.xlu1 %139  ;;  %v158_v29 = vsel %vm156_vm10, %v155_v26, %v126_v19  ;;  %v137_v30 = vpop.xlane.xlu0 %136 }
 0x104   :  { %v161_v32 = vsel %vm159_vm11, %v158_v29, %v133_v21  ;;  %v163_v36 = vsel %vm162_vm12, %v160_v34, %v137_v30 }
 0x105   :  { %v164_v35 = vsel %vm162_vm12, %v161_v32, %v140_v28 }
 0x107   :  { %v147_v37 = vpop.xlane.xlu1 %146  ;;  %v144_v38 = vpop.xlane.xlu0 %143 }
 0x108   :  { %v167_v39 = vsel %vm165_vm13, %v164_v35, %v147_v37  ;;  %v166_v40 = vsel %vm165_vm13, %v163_v36, %v144_v38 }
 0x109   :  { %v168_v41 = vsub.f32 %v482_v56, %v166_v40  ;;  %v169_v42 = vsub.f32 %v487_v60, %v167_v39 }
 0x10b   :  { %v170_v43 = vmul.f32 1.442695, %v168_v41  ;;  %v172_v44 = vmul.f32 1.442695, %v169_v42 }
 0x10d   :  { %354 = vpow2.f32 %v170_v43 }
 0x10e   :  { %356 = vpow2.f32 %v172_v44 }
 0x117   :  { %v520_v45 = vpop.eup %354 }
 0x118   :  { %218 = vrot.lane.b32.xlu1 %v520_v45, %s441_s0  ;;  %182 = vrot.lane.b32.xlu0 %v520_v45, %s442_s1  ;;  %v524_v46 = vpop.eup %356  ;;  %v174_v47 = vsel %vm92_vm1, %v520_v45, 0.0 }
 0x119   :  { %v177_v48 = vsel %vm92_vm1, %v524_v46, 0.0 }
 0x11c   :  { %184 = vrot.lane.b32.xlu1 %v524_v46, %s442_s1  ;;  %194 = vrot.lane.b32.xlu0 %v520_v45, %s443_s25 }
 0x120   :  { %196 = vrot.lane.b32.xlu1 %v524_v46, %s443_s25  ;;  %206 = vrot.lane.b32.xlu0 %v520_v45, %s444_s26 }
 0x124   :  { %208 = vrot.lane.b32.xlu1 %v524_v46, %s444_s26  ;;  %230 = vrot.lane.b32.xlu0 %v520_v45, %s445_s27 }
 0x128   :  { %220 = vrot.lane.b32.xlu1 %v524_v46, %s441_s0  ;;  %242 = vrot.lane.b32.xlu0 %v520_v45, %s446_s28 }
 0x12c   :  { %232 = vrot.lane.b32.xlu1 %v524_v46, %s445_s27  ;;  %254 = vrot.lane.b32.xlu0 %v520_v45, %s447_s29 }
 0x130   :  { %244 = vrot.lane.b32.xlu1 %v524_v46, %s446_s28 }
 0x134   :  { %256 = vrot.lane.b32.xlu1 %v524_v46, %s447_s29 }
 0x14b   :  { %175 = vadd.xlane.f32.xlu0 %v174_v47 }
 0x158   :  { %178 = vadd.xlane.f32.xlu1 %v177_v48 }
 0x18a   :  { %v219_v49 = vpop.permute.xlu1 %218  ;;  %v183_v50 = vpop.permute.xlu0 %182 }
 0x18b   :  { %v188_v51 = vsel %vm92_vm1, %v183_v50, 0.0  ;;  %v224_v61 = vsel %vm92_vm1, %v219_v49, 0.0 }
 0x18c   :  { %189 = vadd.xlane.f32.xlu1 %v188_v51 }
 0x18e   :  { %v185_v52 = vpop.permute.xlu1 %184  ;;  %v195_v53 = vpop.permute.xlu0 %194 }
 0x18f   :  { %v200_v54 = vsel %vm92_vm1, %v195_v53, 0.0  ;;  %v191_v6 = vsel %vm92_vm1, %v185_v52, 0.0 }
 0x190   :  { %201 = vadd.xlane.f32.xlu1 %v200_v54 }
 0x192   :  { %v197_v55 = vpop.permute.xlu1 %196  ;;  %v207_v56 = vpop.permute.xlu0 %206 }
 0x193   :  { %v212_v57 = vsel %vm92_vm1, %v207_v56, 0.0  ;;  %v203_v9 = vsel %vm92_vm1, %v197_v55, 0.0 }
 0x194   :  { %213 = vadd.xlane.f32.xlu0 %v212_v57 }
 0x196   :  { %v209_v58 = vpop.permute.xlu1 %208  ;;  %v231_v59 = vpop.permute.xlu0 %230 }
 0x197   :  { %v215_v60 = vsel %vm92_vm1, %v209_v58, 0.0  ;;  %v236_v63 = vsel %vm92_vm1, %v231_v59, 0.0 }
 0x198   :  { %216 = vadd.xlane.f32.xlu1 %v215_v60  ;;  %225 = vadd.xlane.f32.xlu0 %v224_v61 }
 0x19a   :  { %v221_v62 = vpop.permute.xlu1 %220  ;;  %v243_v0 = vpop.permute.xlu0 %242 }
 0x19b   :  { %v248_v3 = vsel %vm92_vm1, %v243_v0, 0.0  ;;  %v227_v10 = vsel %vm92_vm1, %v221_v62, 0.0 }
 0x19c   :  { %237 = vadd.xlane.f32.xlu0 %v236_v63 }
 0x19e   :  { %v233_v1 = vpop.permute.xlu1 %232  ;;  %v255_v11 = vpop.permute.xlu0 %254 }
 0x19f   :  { %v239_v2 = vsel %vm92_vm1, %v233_v1, 0.0  ;;  %v260_v12 = vsel %vm92_vm1, %v255_v11, 0.0 }
 0x1a0   :  { %240 = vadd.xlane.f32.xlu1 %v239_v2  ;;  %249 = vadd.xlane.f32.xlu0 %v248_v3 }
 0x1a2   :  { %v245_v4 = vpop.permute.xlu1 %244 }
 0x1a3   :  { %v251_v5 = vsel %vm92_vm1, %v245_v4, 0.0 }
 0x1a4   :  { %252 = vadd.xlane.f32.xlu1 %v251_v5  ;;  %192 = vadd.xlane.f32.xlu0 %v191_v6 }
 0x1a6   :  { %v257_v7 = vpop.permute.xlu1 %256 }
 0x1a7   :  { %v263_v8 = vsel %vm92_vm1, %v257_v7, 0.0 }
 0x1a8   :  { %264 = vadd.xlane.f32.xlu1 %v263_v8  ;;  %204 = vadd.xlane.f32.xlu0 %v203_v9 }
 0x1ac   :  { %228 = vadd.xlane.f32.xlu0 %v227_v10 }
 0x1b0   :  { %261 = vadd.xlane.f32.xlu0 %v260_v12 }
 0x1d8   :  { %v176_v14 = vpop.xlane.xlu0 %175 }
 0x1d9   :  { %358 = vrcp.f32 %v176_v14 }
 0x1e3   :  { %v359_v26 = vpop.eup %358 }
 0x1e5   :  { %v179_v13 = vpop.xlane.xlu1 %178 }
 0x1e6   :  { %360 = vrcp.f32 %v179_v13 }
 0x1f0   :  { %v361_v28 = vpop.eup %360 }
 0x219   :  { %v190_v15 = vpop.xlane.xlu1 %189 }
 0x21a   :  { %362 = vrcp.f32 %v190_v15 }
 0x21d   :  { %v202_v18 = vpop.xlane.xlu1 %201 }
 0x21e   :  { %364 = vrcp.f32 %v202_v18 }
 0x221   :  { %v214_v16 = vpop.xlane.xlu0 %213 }
 0x222   :  { %366 = vrcp.f32 %v214_v16 }
 0x224   :  { %v363_v30 = vpop.eup %362 }
 0x225   :  { %v226_v17 = vpop.xlane.xlu0 %225  ;;  %v217_v20 = vpop.xlane.xlu1 %216  ;;  %v298_v42 = vsel %vm92_vm1, %v359_v26, %v363_v30 }
 0x228   :  { %v365_v31 = vpop.eup %364 }
 0x229   :  { %v238_v19 = vpop.xlane.xlu0 %237  ;;  %v300_v44 = vsel %vm150_vm8, %v298_v42, %v365_v31 }
 0x22c   :  { %v367_v32 = vpop.eup %366 }
 0x22d   :  { %v250_v21 = vpop.xlane.xlu0 %249  ;;  %v241_v22 = vpop.xlane.xlu1 %240  ;;  %v302_v49 = vsel %vm153_vm9, %v300_v44, %v367_v32 }
 0x231   :  { %v193_v23 = vpop.xlane.xlu0 %192  ;;  %v253_v24 = vpop.xlane.xlu1 %252 }
 0x232   :  { %368 = vrcp.f32 %v193_v23 }
 0x233   :  { %370 = vrcp.f32 %v217_v20 }
 0x234   :  { %372 = vrcp.f32 %v226_v17 }
 0x235   :  { %v205_v25 = vpop.xlane.xlu0 %204  ;;  %v265_v29 = vpop.xlane.xlu1 %264 }
 0x236   :  { %374 = vrcp.f32 %v205_v25 }
 0x237   :  { %376 = vrcp.f32 %v238_v19 }
 0x238   :  { %378 = vrcp.f32 %v241_v22 }
 0x239   :  { %v229_v27 = vpop.xlane.xlu0 %228 }
 0x23a   :  { %380 = vrcp.f32 %v229_v27 }
 0x23b   :  { %382 = vrcp.f32 %v250_v21 }
 0x23c   :  { %384 = vrcp.f32 %v253_v24  ;;  %v369_v34 = vpop.eup %368 }
 0x23d   :  { %386 = vrcp.f32 %v265_v29  ;;  %v262_v33 = vpop.xlane.xlu0 %261  ;;  %v371_v35 = vpop.eup %370  ;;  %v299_v38 = vsel %vm92_vm1, %v361_v28, %v369_v34 }
 0x23e   :  { %388 = vrcp.f32 %v262_v33  ;;  %v373_v36 = vpop.eup %372 }
 0x23f   :  { %v304_v52 = vsel %vm156_vm10, %v302_v49, %v373_v36 }
 0x240   :  { %v375_v37 = vpop.eup %374 }
 0x241   :  { %v377_v39 = vpop.eup %376  ;;  %v301_v40 = vsel %vm150_vm8, %v299_v38, %v375_v37 }
 0x242   :  { %v379_v41 = vpop.eup %378  ;;  %v303_v47 = vsel %vm153_vm9, %v301_v40, %v371_v35  ;;  %v306_v55 = vsel %vm159_vm11, %v304_v52, %v377_v39 }
 0x244   :  { %v381_v43 = vpop.eup %380 }
 0x245   :  { %v383_v48 = vpop.eup %382  ;;  %v305_v50 = vsel %vm156_vm10, %v303_v47, %v381_v43 }
 0x246   :  { %v385_v51 = vpop.eup %384  ;;  %v307_v53 = vsel %vm159_vm11, %v305_v50, %v379_v41  ;;  %v308_v58 = vsel %vm162_vm12, %v306_v55, %v383_v48 }
 0x247   :  { %v387_v54 = vpop.eup %386  ;;  %v309_v56 = vsel %vm162_vm12, %v307_v53, %v385_v51 }
 0x248   :  { %v389_v57 = vpop.eup %388  ;;  %v311_v59 = vsel %vm165_vm13, %v309_v56, %v387_v54 }
 0x249   :  { %v310_v60 = vsel %vm165_vm13, %v308_v58, %v389_v57  ;;  %v313_v61 = vmul.f32 %v524_v46, %v311_v59 }
 0x24a   :  { %v312_v62 = vmul.f32 %v520_v45, %v310_v60 }
 0x24b   :  { %315 = vst [vmem:[#allocation7 + $0x8] sm:$0xff] %v313_v61 }
 0x24c   :  { %314 = vst [vmem:[#allocation7] sm:$0xff] %v312_v62 }
 0x24d   :  { %423 = shalt.err (!%p420_p12)
}
 0x24e   :  { %s424_s7 = scalar_lea.hbm %s589_s2, 256 }
 0x24f   :  { %p425_p13 = scmp.ne.s32.totalorder %s589_s2, %s424_s7  ;;  %p428_p0 = scmp.lt.u32.totalorder %s424_s7, %s589_s2 }
 0x251   :  { %p430_p1 = pnand %p428_p0, %p425_p13 }
 0x253   :  { %433 = shalt.err (!%p430_p1)
}
 0x254   :  { %327 = dma.vmem_to_hbm [thread:$0]  %s322_s3, 256, %s589_s2, [#allocation6], %s439_s19, %s439_s19, %s440_s20  }
 0x255   :  { %436 = dma.done.wait [#allocation6], 256  }
 0x256   :  { %437 = vsyncadd [#allocation6], 4294967040 }
 0x257   :  { %331 = vsyncpa [#allocation5], 1 }
 0x258   :  { %332 = vsyncpa [#allocation6], 1 }

</bundles_post_ra>
